<compile_context>
chip_gen: v5e
topology: v5e:2x2
jax: 0.10.0
libtpu: 0.0.40
codegen_flags: <defaults>
</compile_context>

<pallas_src>
import functools

import numpy as np
import jax
import jax.numpy as jnp
from jax import lax
from jax.experimental import pallas as pl
from jax.experimental.pallas import tpu as pltpu


_SUBLANE = 8
_MAX_ROW_TILE = 1024
_MAX_K_TILE = 1024          # multiple of 128


def _detect_vmem():
    """Generation-aware VMEM numbers (v5e/v6e: 128 MiB physical, v7x: 64 MiB)."""
    phys = 64 * 1024 * 1024                       # conservative fallback (v7x-sized)
    try:
        cap = int(pltpu.get_tpu_info().vmem_capacity_bytes)
        if cap > 0:
            phys = cap
    except Exception:
        pass
    return (3 * phys) // 4, phys // 2             # (vmem_limit_bytes, working budget)


_VMEM_LIMIT, _VMEM_BUDGET = _detect_vmem()


def _round_up(x, m):
    return ((x + m - 1) // m) * m


def _round_down(x, m):
    return (x // m) * m


def _cdiv(a, b):
    return (a + b - 1) // b


def _pick_row_tile(n_rows, per_row_bytes, fixed_bytes, want_split):
    """Largest multiple-of-8 row tile that fits the VMEM budget.

    per_row_bytes / fixed_bytes must already include double-buffering (also for the
    constant-index 'resident' blocks) and in-kernel temporaries.  want_split caps the
    tile so the parallel row axis gets >= 2 grid steps (keeps both v7x TCs busy).
    """
    n_up = _round_up(max(int(n_rows), 1), _SUBLANE)
    cap = min(_MAX_ROW_TILE, n_up)
    if want_split and n_up >= 2 * _SUBLANE:
        cap = min(cap, max(_SUBLANE, _round_down(n_up // 2, _SUBLANE)))
    tm = max(_SUBLANE, _round_down(cap, _SUBLANE))
    while tm > _SUBLANE and fixed_bytes + tm * per_row_bytes > _VMEM_BUDGET:
        tm -= _SUBLANE
    return tm


# ----------------------------------------------------------------------------
# Kernel 1: metapath aggregation for type-0 (center) nodes.
#   out = (mean_p adj_p) @ feat0, folded into one bf16 MXU matmul per (row, K) tile
#   with f32 accumulation in the resident output block.
# ----------------------------------------------------------------------------
def _agg_tile_sizes(p, n0, d):
    """(row_tile, k_tile) for the metapath-aggregation kernel."""
    # K (contraction) tile: cover all of n0 when small (block dim == full array dim
    # is always legal); otherwise a 128-aligned slice so VMEM stays bounded.
    tk = n0 if n0 <= _MAX_K_TILE else _MAX_K_TILE

    def per_row(tk_):
        adj_blk = 2 * p * tk_ * 2        # bf16 adj block rows, double-buffered
        out_blk = 2 * d * 4              # f32 resident output block rows
        temps = 4 * tk_ * 4              # in-kernel f32 sum / mask temporaries
        return adj_blk + out_blk + temps

    def fixed(tk_):
        return 2 * tk_ * d * 2           # bf16 feat block, double-buffered

    while (tk > 128 and tk % 128 == 0
           and fixed(tk) + _SUBLANE * per_row(tk) > _VMEM_BUDGET):
        tk -= 128
    tm = _pick_row_tile(n0, per_row(tk), fixed(tk), want_split=(n0 > _SUBLANE))
    return tm, tk


def _agg_kernel(adj_ref, feat_ref, out_ref, *, n_valid_k, inv_p):
    # adj_ref: (P, tm, tk) bf16, feat_ref: (tk, D) bf16, out_ref: (tm, D) f32
    k = pl.program_id(1)

    @pl.when(k == 0)
    def _init():
        out_ref[...] = jnp.zeros_like(out_ref)

    # Mean over metapaths on the VPU, slice-by-slice to avoid a (P, tm, tk) f32 temp.
    num_p = adj_ref.shape[0]
    adj_sum = adj_ref[0].astype(jnp.float32)
    for p in range(1, num_p):
        adj_sum = adj_sum + adj_ref[p].astype(jnp.float32)

    tm, tk = adj_sum.shape
    # Mask contraction columns past n_valid_k: the ragged last K block of the
    # (un-padded) adjacency reads unspecified data which must not contribute.
    col = k * tk + lax.broadcasted_iota(jnp.int32, (tm, tk), 1)
    adj_mean = jnp.where(col < n_valid_k, adj_sum * inv_p, 0.0).astype(jnp.bfloat16)

    out_ref[...] += jnp.dot(adj_mean, feat_ref[...],
                            preferred_element_type=jnp.float32)


def metapath_aggregate(adj_bf16, feat0_bf16):
    """adj: (P, N0, N0) bf16, feat0: (N0, D) bf16 -> (N0, D) f32."""
    P, N0, _ = adj_bf16.shape
    D = feat0_bf16.shape[1]
    tm, tk = _agg_tile_sizes(P, N0, D)
    m_steps = _cdiv(N0, tm)
    k_steps = _cdiv(N0, tk)
    m_pad = m_steps * tm
    k_pad = k_steps * tk
    # Cheap zero-row pad of feat0 (N0 x D) so the ragged last K block of adj meets
    # exact zeros; the big adjacency itself is never padded/copied.
    if k_pad != N0:
        feat0_bf16 = jnp.pad(feat0_bf16, ((0, k_pad - N0), (0, 0)))

    kernel = functools.partial(_agg_kernel, n_valid_k=int(N0), inv_p=1.0 / float(P))
    out = pl.pallas_call(
        kernel,
        out_shape=jax.ShapeDtypeStruct((m_pad, D), jnp.float32),
        grid=(m_steps, k_steps),
        in_specs=[
            pl.BlockSpec((P, tm, tk), lambda i, k: (0, i, k)),
            pl.BlockSpec((tk, D), lambda i, k: (k, 0)),
        ],
        out_specs=pl.BlockSpec((tm, D), lambda i, k: (i, 0)),
        compiler_params=pltpu.CompilerParams(
            dimension_semantics=("parallel", "arbitrary"),
            vmem_limit_bytes=_VMEM_LIMIT,
        ),
    )(adj_bf16, feat0_bf16)
    return out[:N0]


# ----------------------------------------------------------------------------
# Kernel 2: fc Linear  h_fc = h @ W^T + b, row-tiled; W^T (bf16) and bias resident,
# h cast to bf16 in-VMEM (h stays f32 in HBM because it is also a layer output).
# ----------------------------------------------------------------------------
def _fc_tile_size(n, d, o):
    per_row = 2 * d * 4 + 2 * o * 4 + d * 2 + o * 4   # h / out blocks (dbuf) + temps
    fixed = 2 * (d * o * 2 + o * 4)                    # resident wt + bias, dbuf
    return _pick_row_tile(n, per_row, fixed, want_split=(n > _SUBLANE))


def _fc_kernel(h_ref, wt_ref, b_ref, out_ref):
    h_bf = h_ref[...].astype(jnp.bfloat16)
    out_ref[...] = (
        jnp.dot(h_bf, wt_ref[...], preferred_element_type=jnp.float32)
        + b_ref[...]
    )


def linear_fc(h, wt_bf16, b_2d):
    """h: (N, D) f32, wt: (D, O) bf16, b: (1, O) f32 -> (N, O) f32."""
    N, D = h.shape
    O = wt_bf16.shape[1]
    tm = _fc_tile_size(N, D, O)
    m_steps = _cdiv(N, tm)
    m_pad = m_steps * tm
    out = pl.pallas_call(
        _fc_kernel,
        out_shape=jax.ShapeDtypeStruct((m_pad, O), jnp.float32),
        grid=(m_steps,),
        in_specs=[
            pl.BlockSpec((tm, D), lambda i: (i, 0)),
            pl.BlockSpec((D, O), lambda i: (0, 0)),
            pl.BlockSpec((1, O), lambda i: (0, 0)),
        ],
        out_specs=pl.BlockSpec((tm, O), lambda i: (i, 0)),
        compiler_params=pltpu.CompilerParams(
            dimension_semantics=("parallel",),
            vmem_limit_bytes=_VMEM_LIMIT,
        ),
    )(h, wt_bf16, b_2d)
    return out[:N]


# ----------------------------------------------------------------------------
# Jitted device glue: casts, gathers, aggregation, assembly, fc, slicing.
# ----------------------------------------------------------------------------
@functools.partial(jax.jit, static_argnames=("n_nodes",))
def _forward_device(features, adj, wt_bf16, b_2d, idx, fidx, *, n_nodes):
    features = features.astype(jnp.float32)
    d = features.shape[1]
    # bf16 adjacency halves the dominant HBM traffic inside the kernel; in the full
    # POHGNN_nc_mb model the adjacency is shared across layers so the cast amortizes.
    adj_bf16 = adj.astype(jnp.bfloat16)
    feat0 = features[fidx[0]].astype(jnp.bfloat16)
    h_temp = metapath_aggregate(adj_bf16, feat0)          # (N0, d) f32

    # Assemble h by node type (scatter; fuses inside the jit).
    h = jnp.zeros((n_nodes, d), jnp.float32)
    h = h.at[idx[0]].set(h_temp)
    for k in range(1, 4):
        if idx[k].shape[0] > 0:
            h = h.at[idx[k]].set(features[fidx[k]])

    h_fc = linear_fc(h, wt_bf16, b_2d)                    # (n_nodes, out_dim) f32
    return h_fc, h


# ----------------------------------------------------------------------------
# Module
# ----------------------------------------------------------------------------
class POHGNNncmbLayerPallas:
    def __init__(self, num_metapaths, etypes_list, in_dim, out_dim, key):
        self.num_metapaths = num_metapaths
        self.etypes_list = etypes_list
        self.in_dim = in_dim
        self.out_dim = out_dim

        kw, kb = jax.random.split(key)
        # xavier_normal_(gain=1.414) on fc.weight (torch layout: (out_dim, in_dim))
        std = 1.414 * np.sqrt(2.0 / (in_dim + out_dim))
        self.fc_w = std * jax.random.normal(kw, (out_dim, in_dim), jnp.float32)
        # nn.Linear default bias init: U(-1/sqrt(in_dim), 1/sqrt(in_dim))
        bound = 1.0 / np.sqrt(in_dim)
        self.fc_b = jax.random.uniform(kb, (out_dim,), jnp.float32,
                                       minval=-bound, maxval=bound)

        # kernel-facing parameters: transpose once, bf16 weight for the MXU
        self.wt_bf16 = jnp.transpose(self.fc_w).astype(jnp.bfloat16)   # (in, out)
        self.b_2d = self.fc_b.reshape(1, out_dim)

    def forward(self, inputs):
        features, type_mask, adj_matrixes, feature_idxes = inputs

        # host-side static index prep, mirroring np.where() in the torch reference
        type_mask_np = np.asarray(type_mask)
        n_nodes = int(type_mask_np.shape[0])
        idx = tuple(jnp.asarray(np.where(type_mask_np == k)[0], dtype=jnp.int32)
                    for k in range(4))
        fidx = tuple(jnp.asarray(f, dtype=jnp.int32) for f in feature_idxes)

        n0 = int(adj_matrixes.shape[1])
        assert int(fidx[0].shape[0]) == n0 and int(idx[0].shape[0]) == n0, (
            "feature_idxes[0] / type-0 node count must match the adjacency size")

        # TODO(synk): POHGNN_ctr_ntype_specific source is not provided; stand-in
        # semantics = mean over metapaths of (adj_p @ type-0 features) for the center
        # type, temps = raw features of types 1/2/3 (cast to float32).
        return _forward_device(jnp.asarray(features), jnp.asarray(adj_matrixes),
                               self.wt_bf16, self.b_2d, idx, fidx, n_nodes=n_nodes)


# ----------------------------------------------------------------------------
# Demo
# ----------------------------------------------------------------------------
if __name__ == "__main__":
    key = jax.random.PRNGKey(0)
    k_feat, k_adj, k_params = jax.random.split(key, 3)

    in_dim, out_dim = 32, 16
    num_metapaths = 3
    etypes_list = [[0, 1], [0, 2], [1, 2]]

    # 32 nodes: 8 of each of the 4 node types (contiguous type segments)
    nodes_per_type = 8
    n_nodes = 4 * nodes_per_type
    type_mask = np.repeat(np.arange(4), nodes_per_type).astype(np.int32)
    feature_idxes = [jnp.asarray(np.where(type_mask == k)[0], dtype=jnp.int32)
                     for k in range(4)]

    features = jax.random.normal(k_feat, (n_nodes, in_dim), jnp.float32)
    adj_matrixes = jax.random.uniform(
        k_adj, (num_metapaths, nodes_per_type, nodes_per_type), jnp.float32)

    layer = POHGNNncmbLayerPallas(num_metapaths, etypes_list, in_dim, out_dim,
                                  k_params)
    h_fc, h = layer.forward((features, type_mask, adj_matrixes, feature_idxes))
    jax.block_until_ready((h_fc, h))

    assert h_fc.shape == (n_nodes, out_dim)
    assert h.shape == (n_nodes, in_dim)

    # numpy reference of the same stand-in semantics; the kernels use bf16 MXU
    # operands with f32 accumulation, so the reference bf16-rounds the operands too.
    def bf16r(x):
        return np.asarray(jnp.asarray(np.asarray(x), jnp.float32)
                          .astype(jnp.bfloat16).astype(jnp.float32),
                          dtype=np.float64)

    f_np = np.asarray(features, dtype=np.float64)
    idx_np = [np.where(type_mask == k)[0] for k in range(4)]

    adj_bf = np.asarray(bf16r(np.asarray(adj_matrixes)), dtype=np.float32)
    adj_mean = bf16r(adj_bf.sum(axis=0, dtype=np.float32)
                     * np.float32(1.0 / num_metapaths))
    feat0_bf = bf16r(f_np[np.asarray(feature_idxes[0])])
    h_temp_ref = adj_mean @ feat0_bf

    h_ref = np.zeros((n_nodes, in_dim), dtype=np.float64)
    h_ref[idx_np[0]] = h_temp_ref
    for k in (1, 2, 3):
        h_ref[idx_np[k]] = f_np[np.asarray(feature_idxes[k])]
    hfc_ref = (bf16r(h_ref) @ bf16r(np.asarray(layer.fc_w).T)
               + np.asarray(layer.fc_b, dtype=np.float64))

    np.testing.assert_allclose(np.asarray(h), h_ref, rtol=1e-2, atol=1e-2)
    np.testing.assert_allclose(np.asarray(h_fc), hfc_ref, rtol=1e-2, atol=1e-2)

    print("KERNEL_OK")
</pallas_src>

<mosaic_0001>
module attributes {stable_mosaic.version = 11 : i64} {
  func.func @_agg_kernel(%arg0: i32, %arg1: i32, %arg2: memref<3x8x8xbf16, #tpu.memory_space<vmem>>, %arg3: memref<8x32xbf16, #tpu.memory_space<vmem>>, %arg4: memref<8x32xf32, #tpu.memory_space<vmem>>) attributes {dimension_semantics = [#tpu.dimension_semantics<parallel>, #tpu.dimension_semantics<arbitrary>], iteration_bounds = array<i64: 1, 1>, scalar_prefetch = 0 : i64, scratch_operands = 0 : i64, tpu.core_type = #tpu.core_type<tc>, window_params = [{transform_indices = @transform_0, window_bounds = array<i64: 3, 8, 8>}, {transform_indices = @transform_1, window_bounds = array<i64: 8, 32>}, {transform_indices = @transform_2, window_bounds = array<i64: 8, 32>}]} {
    %c0_i32 = arith.constant 0 : i32
    %0 = arith.cmpi eq, %arg1, %c0_i32 : i32
    %1 = arith.extui %0 : i1 to i32
    %c0_i32_0 = arith.constant 0 : i32
    %2 = arith.cmpi ne, %1, %c0_i32_0 : i32
    scf.if %2 {
      %cst_16 = arith.constant 0.000000e+00 : f32
      %30 = vector.broadcast %cst_16 : f32 to vector<8x32xf32>
      %c0_17 = arith.constant 0 : index
      %c0_18 = arith.constant 0 : index
      %31 = vector.load %arg4[%c0_17, %c0_18] : memref<8x32xf32, #tpu.memory_space<vmem>>, vector<8x32xf32>
      tpu.vector_store %arg4[%c0_17, %c0_18], %30 {strides = array<i32>} : memref<8x32xf32, #tpu.memory_space<vmem>>, vector<8x32xf32>,
    } else {
    }
    %c0 = arith.constant 0 : index
    %c0_1 = arith.constant 0 : index
    %c0_2 = arith.constant 0 : index
    %3 = vector.load %arg2[%c0, %c0_1, %c0_2] : memref<3x8x8xbf16, #tpu.memory_space<vmem>>, vector<1x8x8xbf16>
    %4 = vector.shape_cast %3 : vector<1x8x8xbf16> to vector<8x8xbf16>
    %5 = arith.extf %4 : vector<8x8xbf16> to vector<8x8xf32>
    %c1 = arith.constant 1 : index
    %c0_3 = arith.constant 0 : index
    %c0_4 = arith.constant 0 : index
    %6 = vector.load %arg2[%c1, %c0_3, %c0_4] : memref<3x8x8xbf16, #tpu.memory_space<vmem>>, vector<1x8x8xbf16>
    %7 = vector.shape_cast %6 : vector<1x8x8xbf16> to vector<8x8xbf16>
    %8 = arith.extf %7 : vector<8x8xbf16> to vector<8x8xf32>
    %9 = arith.addf %5, %8 : vector<8x8xf32>
    %c2 = arith.constant 2 : index
    %c0_5 = arith.constant 0 : index
    %c0_6 = arith.constant 0 : index
    %10 = vector.load %arg2[%c2, %c0_5, %c0_6] : memref<3x8x8xbf16, #tpu.memory_space<vmem>>, vector<1x8x8xbf16>
    %11 = vector.shape_cast %10 : vector<1x8x8xbf16> to vector<8x8xbf16>
    %12 = arith.extf %11 : vector<8x8xbf16> to vector<8x8xf32>
    %13 = arith.addf %9, %12 : vector<8x8xf32>
    %c8_i32 = arith.constant 8 : i32
    %14 = arith.muli %arg1, %c8_i32 : i32
    %15 = tpu.iota {dimensions = array<i32: 1>} : vector<8x8xi32>
    %16 = vector.broadcast %14 : i32 to vector<8x8xi32>
    %17 = arith.addi %16, %15 : vector<8x8xi32>
    %c8_i32_7 = arith.constant 8 : i32
    %18 = vector.broadcast %c8_i32_7 : i32 to vector<8x8xi32>
    %19 = arith.cmpi slt, %17, %18 : vector<8x8xi32>
    %cst = arith.constant 0.333333343 : f32
    %20 = vector.broadcast %cst : f32 to vector<8x8xf32>
    %21 = arith.mulf %13, %20 : vector<8x8xf32>
    %cst_8 = arith.constant 0.000000e+00 : f32
    %22 = vector.broadcast %cst_8 : f32 to vector<8x8xf32>
    %23 = arith.select %19, %21, %22 : vector<8x8xi1>, vector<8x8xf32>
    %24 = arith.truncf %23 : vector<8x8xf32> to vector<8x8xbf16>
    %c0_9 = arith.constant 0 : index
    %c0_10 = arith.constant 0 : index
    %25 = vector.load %arg4[%c0_9, %c0_10] : memref<8x32xf32, #tpu.memory_space<vmem>>, vector<8x32xf32>
    %c0_11 = arith.constant 0 : index
    %c0_12 = arith.constant 0 : index
    %26 = vector.load %arg3[%c0_11, %c0_12] : memref<8x32xbf16, #tpu.memory_space<vmem>>, vector<8x32xbf16>
    %cst_13 = arith.constant dense<0.000000e+00> : vector<8x32xf32>
    %27 = tpu.matmul %24, %26, %cst_13 {dimension_numbers = #tpu.dot_dimension_numbers<[1], [0], [0], [1], [0, 0, 1, 1], [], []>} : vector<8x8xbf16>, vector<8x32xbf16>, vector<8x32xf32> -> vector<8x32xf32>
    %28 = arith.addf %25, %27 : vector<8x32xf32>
    %c0_14 = arith.constant 0 : index
    %c0_15 = arith.constant 0 : index
    %29 = vector.load %arg4[%c0_14, %c0_15] : memref<8x32xf32, #tpu.memory_space<vmem>>, vector<8x32xf32>
    tpu.vector_store %arg4[%c0_14, %c0_15], %28 {strides = array<i32>} : memref<8x32xf32, #tpu.memory_space<vmem>>, vector<8x32xf32>,
    return
  }
  func.func @transform_0(%arg0: i32, %arg1: i32) -> (i32, i32, i32) {
    %c0_i32 = arith.constant 0 : i32
    %c0_i32_0 = arith.constant 0 : i32
    return %c0_i32, %arg0, %arg1 : i32, i32, i32
  }
  func.func @transform_1(%arg0: i32, %arg1: i32) -> (i32, i32) {
    %c0_i32 = arith.constant 0 : i32
    %c0_i32_0 = arith.constant 0 : i32
    return %arg1, %c0_i32 : i32, i32
  }
  func.func @transform_2(%arg0: i32, %arg1: i32) -> (i32, i32) {
    %c0_i32 = arith.constant 0 : i32
    %c0_i32_0 = arith.constant 0 : i32
    return %arg0, %c0_i32 : i32, i32
  }
}

module attributes {stable_mosaic.version = 11 : i64} {
  func.func @_fc_kernel(%arg0: i32, %arg1: memref<16x32xf32, #tpu.memory_space<vmem>>, %arg2: memref<32x16xbf16, #tpu.memory_space<vmem>>, %arg3: memref<1x16xf32, #tpu.memory_space<vmem>>, %arg4: memref<16x16xf32, #tpu.memory_space<vmem>>) attributes {dimension_semantics = [#tpu.dimension_semantics<parallel>], iteration_bounds = array<i64: 2>, scalar_prefetch = 0 : i64, scratch_operands = 0 : i64, tpu.core_type = #tpu.core_type<tc>, window_params = [{transform_indices = @transform_0, window_bounds = array<i64: 16, 32>}, {pipeline_mode = #tpu.pipeline_mode<synchronous>, transform_indices = @transform_1, window_bounds = array<i64: 32, 16>}, {pipeline_mode = #tpu.pipeline_mode<synchronous>, transform_indices = @transform_2, window_bounds = array<i64: 1, 16>}, {transform_indices = @transform_3, window_bounds = array<i64: 16, 16>}]} {
    %c0 = arith.constant 0 : index
    %c0_0 = arith.constant 0 : index
    %0 = vector.load %arg1[%c0, %c0_0] : memref<16x32xf32, #tpu.memory_space<vmem>>, vector<16x32xf32>
    %1 = arith.truncf %0 : vector<16x32xf32> to vector<16x32xbf16>
    %c0_1 = arith.constant 0 : index
    %c0_2 = arith.constant 0 : index
    %2 = vector.load %arg2[%c0_1, %c0_2] : memref<32x16xbf16, #tpu.memory_space<vmem>>, vector<32x16xbf16>
    %cst = arith.constant dense<0.000000e+00> : vector<16x16xf32>
    %3 = tpu.matmul %1, %2, %cst {dimension_numbers = #tpu.dot_dimension_numbers<[1], [0], [0], [1], [0, 0, 1, 1], [], []>} : vector<16x32xbf16>, vector<32x16xbf16>, vector<16x16xf32> -> vector<16x16xf32>
    %c0_3 = arith.constant 0 : index
    %c0_4 = arith.constant 0 : index
    %4 = vector.load %arg3[%c0_3, %c0_4] : memref<1x16xf32, #tpu.memory_space<vmem>>, vector<1x16xf32>
    %5 = vector.broadcast %4 : vector<1x16xf32> to vector<16x16xf32>
    %6 = arith.addf %3, %5 : vector<16x16xf32>
    %c0_5 = arith.constant 0 : index
    %c0_6 = arith.constant 0 : index
    %7 = vector.load %arg4[%c0_5, %c0_6] : memref<16x16xf32, #tpu.memory_space<vmem>>, vector<16x16xf32>
    tpu.vector_store %arg4[%c0_5, %c0_6], %6 {strides = array<i32>} : memref<16x16xf32, #tpu.memory_space<vmem>>, vector<16x16xf32>,
    return
  }
  func.func @transform_0(%arg0: i32) -> (i32, i32) {
    %c0_i32 = arith.constant 0 : i32
    %c0_i32_0 = arith.constant 0 : i32
    return %arg0, %c0_i32 : i32, i32
  }
  func.func @transform_1(%arg0: i32) -> (i32, i32) {
    %c0_i32 = arith.constant 0 : i32
    %c0_i32_0 = arith.constant 0 : i32
    %c0_i32_1 = arith.constant 0 : i32
    return %c0_i32, %c0_i32_0 : i32, i32
  }
  func.func @transform_2(%arg0: i32) -> (i32, i32) {
    %c0_i32 = arith.constant 0 : i32
    %c0_i32_0 = arith.constant 0 : i32
    %c0_i32_1 = arith.constant 0 : i32
    return %c0_i32, %c0_i32_0 : i32, i32
  }
  func.func @transform_3(%arg0: i32) -> (i32, i32) {
    %c0_i32 = arith.constant 0 : i32
    %c0_i32_0 = arith.constant 0 : i32
    return %arg0, %c0_i32 : i32, i32
  }
}

</mosaic_0001>

<bundles_post_ra>
// kernel: _forward_device.3
= control target key start
LH: loop header
LB: loop body
LE: loop exit
PB: predicated region body
PF: predicated region fallthrough
CT: control target
= control target key end

     0   :  { %s334_s12 = smov 0   ;;  %s360_s0 = inlined_call_operand.vmem [shape: f32[32,32], index: 0, kind: input, shape index: {}]   ;;  %s361_s1 = inlined_call_operand.vmem [shape: bf16[32,16], index: 1, kind: input, shape index: {}]   ;;  %s362_s2 = inlined_call_operand.vmem [shape: f32[1,16], index: 2, kind: input, shape index: {}]   ;;  %s363_s3 = inlined_call_operand.vmem [shape: f32[32,16], index: 3, kind: output, shape index: {}]  }
   0x1 LB: > { %s275_s13 = sadd.s32 4294967295, %s312_s12   ;;  %p279_p0 = scmp.ge.s32.totalorder %s312_s12, 1  ;;  %s312_s12 = sphi %s334_s12, %s13_s12  }
   0x2   : > { %p138_p1 = scmp.lt.s32.totalorder %s312_s12, 3 }
   0x4   : > { %p139_p2 = pnand %p279_p0, %p138_p1 }
   0x5   : > { %s280_s16 = sshll.u32 (!%p139_p2), %s275_s13, 1 }
   0x6   : > { %142 = sbr.rel (%p139_p2) target bundleno = 156 (0x9c), region = 32  ;;  %p163_p3 = scmp.lt.s32.totalorder (!%p139_p2), %s280_s16, 3 }
   0xb   : > { %v296_v0 = vld [vmem:[%s361_s1 + $0x8] sm:$0xff]  ;;  %v295_v1 = vld [vmem:[%s361_s1] sm:$0xff]  ;;  %s365_s16 = smov (!%p163_p3, %s280_s16), 3  ;;  %vm198_vm0 = vcmask 261120   ;;  %vm216_vm1 = vcmask 130048  }
   0xc   : > { %208 = vmatpush.bf16.msra.mxu0 %v296_v0  ;;  %s281_s19 = sshll.u32 %s365_s16, 3  ;;  %v305_v5 = vld [vmem:[%s362_s2] ss:$0 sm:$0xff] }
   0xd   : > { %s166_s22 = scalar_lea.vmem %s360_s0, %s281_s19  ;;  %s172_s27 = scalar_lea.vmem %s363_s3, %s281_s19 }
   0xe   : > { %v175_v2 = vld [vmem:[%s166_s22] sm:$0xff]  ;;  %v176_v3 = vld [vmem:[%s166_s22 + $0x8] sm:$0xff] }
   0xf   : > { %v177_v4 = vpack.c.bf16 %v176_v3, %v175_v2 }
  0x10   : > { %209 = vmatpush.bf16.msra.mxu0 %v295_v1 }
  0x13   : > { %292 = vmatmul.msk.bf16.vlgmr.msra.gmra.mxu0 %vm198_vm0, %v177_v4 }
  0x90   : > { %v211_v6 = vpop.f32.mrf.mxu0 }
  0x91   : > { %v212_v7 = vadd.f32 %v305_v5, %v211_v6 }
  0x93   : > { %217 = vst.msk [vmem:[%s172_s27] sm:$0xff] %vm216_vm1, %v212_v7 }
  0x98   : > { %v213_v8 = vpop.f32.mrf.mxu0 }
  0x99   : > { %v214_v9 = vadd.f32 %v305_v5, %v213_v8 }
  0x9b   : > { %218 = vst.msk [vmem:[%s172_s27 + $0x8] sm:$0xff] %vm216_vm1, %v214_v9 }
  0x9c PF: > { %s13_s12 = sadd.s32 1, %s312_s12  }
  0x9d   : > { %p10_p4 = scmp.ge.s32.totalorder %s13_s12, 4  }
  0x9f   :  { %12 = sbr.rel (!%p10_p4) target bundleno = 1 (0x1), region = 62 }

// kernel: _forward_device.2
= control target key start
LH: loop header
LB: loop body
LE: loop exit
PB: predicated region body
PF: predicated region fallthrough
CT: control target
= control target key end

     0   :  { %vm43_vm0 = vcmask 1043456   ;;  %v29_v0 = vlaneseq  ;;  %vm16_vm1 = vcmask 261120   ;;  %v75_v8 = vmov 0.0   ;;  %s111_s1 = inlined_call_operand.vmem [shape: bf16[8,32], index: 1, kind: input, shape index: {}]   ;;  %s112_s0 = inlined_call_operand.vmem [shape: bf16[3,8,8], index: 0, kind: input, shape index: {}]   ;;  %s113_s2 = inlined_call_operand.vmem [shape: f32[8,32], index: 2, kind: output, shape index: {}]  }
   0x1   :  { %v38_v1 = vld [vmem:[%s111_s1] sm:$0xf]  ;;  %v68_v3 = vld [vmem:[%s112_s0 + $0x8] sm:$0xf]  ;;  %17 = vst.msk [vmem:[%s113_s2] sm:$0xff] %vm16_vm1, %v75_v8  ;;  %vm39_vm3 = vcmask 64512  }
   0x2   :  { %v71_v2 = vld [vmem:[%s112_s0] sm:$0xff]   ;;  %v45_v4 = vsel %vm43_vm0, %v38_v1, 0  ;;  %v26_v7 = vunpack.c.l.bf16 %v68_v3  ;;  %v30_v9 = vand.u32 127, %v29_v0 }
   0x3   :  { %v72_v5 = vunpack.c.l.bf16 %v71_v2  ;;  %v73_v6 = vunpack.c.h.bf16 %v71_v2  ;;  %54 = vmatpush.bf16.msra.mxu0 %v45_v4 }
   0x4   :  { %vm33_vm2 = vcmp.lt.s32.totalorder %v30_v9, 8 }
   0x5   :  { %v23_v10 = vadd.f32 %v73_v6, %v72_v5 }
   0x7   :  { %v27_v11 = vadd.f32 %v26_v7, %v23_v10 }
   0x8   :  { %v37_v15 = vld [vmem:[%s113_s2] sm:$0xff] }
   0x9   :  { %v34_v12 = vmul.f32 0.33333334, %v27_v11 }
   0xb   :  { %v35_v13 = vsel %vm33_vm2, %v34_v12, 0.0 }
   0xc   :  { %v36_v14 = vpack.c.bf16 %v35_v13, %v35_v13 }
   0xe   :  { %69 = vmatmul.msk.bf16.vlgmr.msra.gmra.mxu0 %vm39_vm3, %v36_v14 }
  0x8b   :  { %v56_v16 = vpop.f32.mrf.mxu0 }
  0x8c   :  { %v60_v17 = vadd.f32 %v56_v16, %v37_v15 }
  0x8e   :  { %62 = vst.msk [vmem:[%s113_s2] sm:$0xff] %vm16_vm1, %v60_v17 }
  0x93   :  { %v58_v18 = vpop.f32.mrf.mxu0 }

</bundles_post_ra>
